<compile_context>
chip_gen: v7x
topology: tpu7x:2x2x1
jax: 0.10.0
libtpu: 0.0.40
codegen_flags: <defaults>
</compile_context>

<pallas_src>
import jax
import jax.numpy as jnp
from jax.experimental import pallas as pl
from jax.experimental.pallas import tpu as pltpu

_IN_FEATURES = 28 * 28      # 784
_NUM_CLASSES = 10
_LANE = 128                 # lane-dense padded output width


def _ffn_kernel(x_ref, w1_ref, b1_ref, w2_ref, b2_ref, o_ref):
    # x_ref : (TB, 784) bf16   w1_ref: (784, H) bf16   b1_ref: (1, H)   f32
    # w2_ref: (H, 128)  bf16   b2_ref: (1, 128) f32    o_ref : (TB, 128) f32
    x = x_ref[...]

    # Hidden layer: bf16 operands on the MXU with f32 accumulation.
    h = jnp.dot(x, w1_ref[...], preferred_element_type=jnp.float32)
    # Bias + ReLU in f32 on the VPU (v5e has no bf16 VPU path).
    h = jnp.maximum(h + b1_ref[...], 0.0)

    # Output layer: feed bf16 back into the MXU; write lane-dense f32 logits.
    out = jnp.dot(h.astype(jnp.bfloat16), w2_ref[...],
                  preferred_element_type=jnp.float32)
    o_ref[...] = out + b2_ref[...]


def _round_up(n, m):
    return ((n + m - 1) // m) * m


def feedforward(x, w1, b1, w2, b2, *, block_b=2048):
    """x: (B, 784) f32; w1: (784, H); b1: (H,); w2: (H, 10); b2: (10,).

    Returns f32 logits of shape (B, 10).
    """
    B, K = x.shape
    assert K == _IN_FEATURES, f"expected {_IN_FEATURES} input features, got {K}"
    H = w1.shape[1]

    # --- lane-dense output: zero-pad the 10-wide class dim to 128 lanes -----
    w2p = jnp.zeros((H, _LANE), jnp.float32).at[:, :_NUM_CLASSES].set(
        w2.astype(jnp.float32))
    b2p = jnp.zeros((1, _LANE), jnp.float32).at[0, :_NUM_CLASSES].set(
        b2.astype(jnp.float32))
    b1_2d = b1.reshape(1, H).astype(jnp.float32)

    # --- bf16 matmul operands (halve HBM traffic for the streamed x) --------
    x_bf = x.astype(jnp.bfloat16)
    w1_bf = w1.astype(jnp.bfloat16)
    w2_bf = w2p.astype(jnp.bfloat16)

    # --- batch tiling: 1-D "parallel" grid over rows -------------------------
    # 16-row alignment = bf16 sublane packing; pad small/ragged batches.
    tb = min(block_b, _round_up(max(B, 1), 16))
    b_pad = _round_up(B, tb)
    if b_pad != B:
        x_bf = jnp.pad(x_bf, ((0, b_pad - B), (0, 0)))
    grid = (b_pad // tb,)

    def const(shape):
        # Constant block index -> tile stays resident in VMEM across the grid.
        return pl.BlockSpec(shape, lambda i: (0, 0))

    out = pl.pallas_call(
        _ffn_kernel,
        out_shape=jax.ShapeDtypeStruct((b_pad, _LANE), jnp.float32),
        grid_spec=pltpu.PrefetchScalarGridSpec(
            num_scalar_prefetch=0,
            grid=grid,
            in_specs=[
                pl.BlockSpec((tb, _IN_FEATURES), lambda i: (i, 0)),  # x (streamed)
                const((_IN_FEATURES, H)),                            # w1 (resident)
                const((1, H)),                                       # b1 (resident)
                const((H, _LANE)),                                   # w2 (resident)
                const((1, _LANE)),                                   # b2 (resident)
            ],
            out_specs=pl.BlockSpec((tb, _LANE), lambda i: (i, 0)),
        ),
        compiler_params=pltpu.CompilerParams(
            dimension_semantics=("parallel",),
        ),
    )(x_bf, w1_bf, b1_2d, w2_bf, b2p)

    # Strip batch padding and the lane padding of the class dim.
    return out[:B, :_NUM_CLASSES]


def init_params(key, hidden_dim):
    """Deterministic init mimicking torch.nn.Linear default U(-1/sqrt(fan_in), +)."""
    k1, k2, k3, k4 = jax.random.split(key, 4)
    in1, in2 = _IN_FEATURES, hidden_dim
    bound1 = 1.0 / jnp.sqrt(in1)
    bound2 = 1.0 / jnp.sqrt(in2)
    # Stored as (in_features, out_features) => kernel computes x @ W.
    w1 = jax.random.uniform(k1, (in1, hidden_dim), jnp.float32, -bound1, bound1)
    b1 = jax.random.uniform(k2, (hidden_dim,), jnp.float32, -bound1, bound1)
    w2 = jax.random.uniform(k3, (in2, _NUM_CLASSES), jnp.float32, -bound2, bound2)
    b2 = jax.random.uniform(k4, (_NUM_CLASSES,), jnp.float32, -bound2, bound2)
    return w1, b1, w2, b2


if __name__ == "__main__":
    key = jax.random.PRNGKey(0)
    kx, kp = jax.random.split(key)

    batch, hidden_dim = 2, 32
    # Input as NCHW MNIST-style image (B, 1, 28, 28), flattened like x.view(B, -1).
    x_img = jax.random.normal(kx, (batch, 1, 28, 28), jnp.float32)
    x = x_img.reshape(batch, -1)

    w1, b1, w2, b2 = init_params(kp, hidden_dim)

    logits = feedforward(x, w1, b1, w2, b2)
    logits = jax.block_until_ready(logits)
    assert logits.shape == (batch, _NUM_CLASSES)

    # Reference 1: bf16-consistent (same operand rounding, f32 accumulation).
    xb = x.astype(jnp.bfloat16).astype(jnp.float32)
    w1b = w1.astype(jnp.bfloat16).astype(jnp.float32)
    w2b = w2.astype(jnp.bfloat16).astype(jnp.float32)
    h_ref = jnp.maximum(xb @ w1b + b1, 0.0)
    ref_bf = h_ref.astype(jnp.bfloat16).astype(jnp.float32) @ w2b + b2
    assert jnp.allclose(logits, ref_bf, atol=2e-3, rtol=2e-3), (
        jnp.max(jnp.abs(logits - ref_bf)))

    # Reference 2: full f32 semantics sanity check (loose tolerance for bf16 cast).
    ref_f32 = jnp.maximum(x @ w1 + b1, 0.0) @ w2 + b2
    assert jnp.allclose(logits, ref_f32, atol=5e-2, rtol=5e-2), (
        jnp.max(jnp.abs(logits - ref_f32)))

    print("KERNEL_OK")
</pallas_src>

<mosaic_0001>
module attributes {stable_mosaic.version = 11 : i64} {
  func.func @_ffn_kernel(%arg0: i32, %arg1: memref<16x784xbf16, #tpu.memory_space<vmem>>, %arg2: memref<784x32xbf16, #tpu.memory_space<vmem>>, %arg3: memref<1x32xf32, #tpu.memory_space<vmem>>, %arg4: memref<32x128xbf16, #tpu.memory_space<vmem>>, %arg5: memref<1x128xf32, #tpu.memory_space<vmem>>, %arg6: memref<16x128xf32, #tpu.memory_space<vmem>>) attributes {dimension_semantics = [#tpu.dimension_semantics<parallel>], iteration_bounds = array<i64: 1>, scalar_prefetch = 0 : i64, scratch_operands = 0 : i64, tpu.core_type = #tpu.core_type<tc>, window_params = [{transform_indices = @transform_0, window_bounds = array<i64: 16, 784>}, {pipeline_mode = #tpu.pipeline_mode<synchronous>, transform_indices = @transform_1, window_bounds = array<i64: 784, 32>}, {pipeline_mode = #tpu.pipeline_mode<synchronous>, transform_indices = @transform_2, window_bounds = array<i64: 1, 32>}, {pipeline_mode = #tpu.pipeline_mode<synchronous>, transform_indices = @transform_3, window_bounds = array<i64: 32, 128>}, {pipeline_mode = #tpu.pipeline_mode<synchronous>, transform_indices = @transform_4, window_bounds = array<i64: 1, 128>}, {transform_indices = @transform_5, window_bounds = array<i64: 16, 128>}]} {
    %c0 = arith.constant 0 : index
    %c0_0 = arith.constant 0 : index
    %0 = vector.load %arg1[%c0, %c0_0] : memref<16x784xbf16, #tpu.memory_space<vmem>>, vector<16x784xbf16>
    %c0_1 = arith.constant 0 : index
    %c0_2 = arith.constant 0 : index
    %1 = vector.load %arg2[%c0_1, %c0_2] : memref<784x32xbf16, #tpu.memory_space<vmem>>, vector<784x32xbf16>
    %cst = arith.constant dense<0.000000e+00> : vector<16x32xf32>
    %2 = tpu.matmul %0, %1, %cst {dimension_numbers = #tpu.dot_dimension_numbers<[1], [0], [0], [1], [0, 0, 1, 1], [], []>} : vector<16x784xbf16>, vector<784x32xbf16>, vector<16x32xf32> -> vector<16x32xf32>
    %c0_3 = arith.constant 0 : index
    %c0_4 = arith.constant 0 : index
    %3 = vector.load %arg3[%c0_3, %c0_4] : memref<1x32xf32, #tpu.memory_space<vmem>>, vector<1x32xf32>
    %4 = vector.broadcast %3 : vector<1x32xf32> to vector<16x32xf32>
    %5 = arith.addf %2, %4 : vector<16x32xf32>
    %cst_5 = arith.constant 0.000000e+00 : f32
    %6 = vector.broadcast %cst_5 : f32 to vector<16x32xf32>
    %7 = arith.maximumf %5, %6 : vector<16x32xf32>
    %8 = arith.truncf %7 : vector<16x32xf32> to vector<16x32xbf16>
    %c0_6 = arith.constant 0 : index
    %c0_7 = arith.constant 0 : index
    %9 = vector.load %arg4[%c0_6, %c0_7] : memref<32x128xbf16, #tpu.memory_space<vmem>>, vector<32x128xbf16>
    %cst_8 = arith.constant dense<0.000000e+00> : vector<16x128xf32>
    %10 = tpu.matmul %8, %9, %cst_8 {dimension_numbers = #tpu.dot_dimension_numbers<[1], [0], [0], [1], [0, 0, 1, 1], [], []>} : vector<16x32xbf16>, vector<32x128xbf16>, vector<16x128xf32> -> vector<16x128xf32>
    %c0_9 = arith.constant 0 : index
    %c0_10 = arith.constant 0 : index
    %11 = vector.load %arg5[%c0_9, %c0_10] : memref<1x128xf32, #tpu.memory_space<vmem>>, vector<1x128xf32>
    %12 = vector.broadcast %11 : vector<1x128xf32> to vector<16x128xf32>
    %13 = arith.addf %10, %12 : vector<16x128xf32>
    %c0_11 = arith.constant 0 : index
    %c0_12 = arith.constant 0 : index
    %14 = vector.load %arg6[%c0_11, %c0_12] : memref<16x128xf32, #tpu.memory_space<vmem>>, vector<16x128xf32>
    tpu.vector_store %arg6[%c0_11, %c0_12], %13 {strides = array<i32>} : memref<16x128xf32, #tpu.memory_space<vmem>>, vector<16x128xf32>,
    return
  }
  func.func @transform_0(%arg0: i32) -> (i32, i32) {
    %c0_i32 = arith.constant 0 : i32
    %c0_i32_0 = arith.constant 0 : i32
    return %arg0, %c0_i32 : i32, i32
  }
  func.func @transform_1(%arg0: i32) -> (i32, i32) {
    %c0_i32 = arith.constant 0 : i32
    %c0_i32_0 = arith.constant 0 : i32
    %c0_i32_1 = arith.constant 0 : i32
    return %c0_i32, %c0_i32_0 : i32, i32
  }
  func.func @transform_2(%arg0: i32) -> (i32, i32) {
    %c0_i32 = arith.constant 0 : i32
    %c0_i32_0 = arith.constant 0 : i32
    %c0_i32_1 = arith.constant 0 : i32
    return %c0_i32, %c0_i32_0 : i32, i32
  }
  func.func @transform_3(%arg0: i32) -> (i32, i32) {
    %c0_i32 = arith.constant 0 : i32
    %c0_i32_0 = arith.constant 0 : i32
    %c0_i32_1 = arith.constant 0 : i32
    return %c0_i32, %c0_i32_0 : i32, i32
  }
  func.func @transform_4(%arg0: i32) -> (i32, i32) {
    %c0_i32 = arith.constant 0 : i32
    %c0_i32_0 = arith.constant 0 : i32
    %c0_i32_1 = arith.constant 0 : i32
    return %c0_i32, %c0_i32_0 : i32, i32
  }
  func.func @transform_5(%arg0: i32) -> (i32, i32) {
    %c0_i32 = arith.constant 0 : i32
    %c0_i32_0 = arith.constant 0 : i32
    return %arg0, %c0_i32 : i32, i32
  }
}

</mosaic_0001>

<bundles_post_ra>
// kernel: tpu_custom_call.1
= control target key start
LH: loop header
LB: loop body
LE: loop exit
PB: predicated region body
PF: predicated region fallthrough
CT: control target
= control target key end

     0   :  { %v958_v38 = vmov 0.0   ;;  %vm959_vm0 = vmmov 0   ;;  %vm464_vm1 = vcmask 130048   ;;  %s1187_s0 = inlined_call_operand.vmem [shape: bf16[16,784], index: 0, kind: input, shape index: {}]   ;;  %s1188_s1 = inlined_call_operand.vmem [shape: bf16[784,32], index: 1, kind: input, shape index: {}]   ;;  %s1189_s2 = inlined_call_operand.vmem [shape: f32[1,32], index: 2, kind: input, shape index: {}]   ;;  %s1190_s3 = inlined_call_operand.vmem [shape: bf16[32,128], index: 3, kind: input, shape index: {}]   ;;  %s1191_s4 = inlined_call_operand.vmem [shape: f32[1,128], index: 4, kind: input, shape index: {}]   ;;  %s1192_s5 = inlined_call_operand.hbm [shape: f32[16,128], index: 5, kind: output, shape index: {}]  }
   0x1   :  { %v873_v0 = vld [vmem:[%s1188_s1 + $0x40] sm:$0xff]   ;;  %v877_v4 = vld [vmem:[%s1188_s1 + $0x48] sm:$0xff]   ;;  %v881_v8 = vld [vmem:[%s1188_s1 + $0x50] sm:$0xff]  }
   0x2   :  { %v874_v1 = vld [vmem:[%s1188_s1] sm:$0xff]   ;;  %783 = vmatprep.subr.bf16.mxu0 %v873_v0  ;;  %v878_v5 = vld [vmem:[%s1188_s1 + $0x8] sm:$0xff]   ;;  %v882_v9 = vld [vmem:[%s1188_s1 + $0x10] sm:$0xff]  }
   0x3   :  { %v875_v2 = vld [vmem:[%s1188_s1 + $0xc0] sm:$0xff]   ;;  %784 = vmatpush3.bf16.msra.mxu0 %v874_v1  ;;  %v879_v6 = vld [vmem:[%s1188_s1 + $0xc8] sm:$0xff]   ;;  %v883_v10 = vld [vmem:[%s1188_s1 + $0xd0] sm:$0xff]  }
   0x4   :  { %v876_v3 = vld [vmem:[%s1188_s1 + $0x80] sm:$0xff]   ;;  %805 = vmatprep.subr.bf16.mxu1 %v875_v2  ;;  %785 = vmatprep.subr.bf16.mxu0 %v877_v4  ;;  %v880_v7 = vld [vmem:[%s1188_s1 + $0x88] sm:$0xff]   ;;  %v884_v11 = vld [vmem:[%s1188_s1 + $0x90] sm:$0xff]  }
   0x5   :  { %806 = vmatpush3.bf16.msra.mxu1 %v876_v3  ;;  %v885_v12 = vld [vmem:[%s1188_s1 + $0x58] sm:$0xff]   ;;  %v889_v16 = vld [vmem:[%s1188_s1 + $0x60] sm:$0xff]   ;;  %v893_v20 = vld [vmem:[%s1188_s1 + $0x68] sm:$0xff]  }
   0x6   :  { %807 = vmatprep.subr.bf16.mxu1 %v879_v6  ;;  %v886_v13 = vld [vmem:[%s1188_s1 + $0x18] sm:$0xff]   ;;  %v890_v17 = vld [vmem:[%s1188_s1 + $0x20] sm:$0xff]   ;;  %v894_v21 = vld [vmem:[%s1188_s1 + $0x28] sm:$0xff]  }
   0x7   :  { %786 = vmatpush3.bf16.msra.mxu0 %v878_v5  ;;  %v887_v14 = vld [vmem:[%s1188_s1 + $0xd8] sm:$0xff]   ;;  %v891_v18 = vld [vmem:[%s1188_s1 + $0xe0] sm:$0xff]   ;;  %v895_v22 = vld [vmem:[%s1188_s1 + $0xe8] sm:$0xff]  }
   0x8   :  { %787 = vmatprep.subr.bf16.mxu0 %v881_v8  ;;  %v888_v15 = vld [vmem:[%s1188_s1 + $0x98] sm:$0xff]   ;;  %v892_v19 = vld [vmem:[%s1188_s1 + $0xa0] sm:$0xff]   ;;  %v896_v23 = vld [vmem:[%s1188_s1 + $0xa8] sm:$0xff]  }
   0x9   :  { %808 = vmatpush3.bf16.msra.mxu1 %v880_v7  ;;  %v897_v24 = vld [vmem:[%s1188_s1 + $0x70] sm:$0xff]   ;;  %v901_v28 = vld [vmem:[%s1188_s1 + $0x78] sm:$0xff]   ;;  %v906_v32 = vld [vmem:[%s1187_s0 + $0x4] ss:$28 sps:$4 sm:$0xff]  }
   0xa   :  { %809 = vmatprep.subr.bf16.mxu1 %v883_v10  ;;  %v898_v25 = vld [vmem:[%s1188_s1 + $0x30] sm:$0xff]   ;;  %v902_v29 = vld [vmem:[%s1188_s1 + $0x38] sm:$0xff]   ;;  %500 = vmatprep.mubr.bf16.mxu0 %v906_v32  ;;  %v908_v34 = vld [vmem:[%s1188_s1 + $0x140] sm:$0xff]  }
   0xb   :  { %788 = vmatpush3.bf16.msra.mxu0 %v882_v9  ;;  %v899_v26 = vld [vmem:[%s1188_s1 + $0xf0] sm:$0xff]   ;;  %v903_v30 = vld [vmem:[%s1188_s1 + $0xf8] sm:$0xff]   ;;  %v909_v35 = vld [vmem:[%s1187_s0 + $0x8] ss:$28 sps:$4 sm:$0xff]  }
   0xc   :  { %789 = vmatprep.subr.bf16.mxu0 %v885_v12  ;;  %v900_v27 = vld [vmem:[%s1188_s1 + $0xb0] sm:$0xff]   ;;  %v904_v31 = vld [vmem:[%s1187_s0] ss:$28 sps:$4 sm:$0xff]   ;;  %v911_v36 = vld [vmem:[%s1187_s0 + $0xc] ss:$28 sps:$4 sm:$0xff]  }
   0xd   :  { %810 = vmatpush3.bf16.msra.mxu1 %v884_v11  ;;  %v907_v33 = vld [vmem:[%s1188_s1 + $0xb8] sm:$0xff]   ;;  %v912_v37 = vld [vmem:[%s1188_s1 + $0x100] sm:$0xff]   ;;  %541 = vmatprep.mubr.bf16.mxu1 %v911_v36  ;;  %v913_v39 = vld [vmem:[%s1188_s1 + $0x148] sm:$0xff]  }
   0xe   :  { %811 = vmatprep.subr.bf16.mxu1 %v887_v14  ;;  %v914_v40 = vld [vmem:[%s1188_s1 + $0x108] sm:$0xff]   ;;  %v915_v41 = vld [vmem:[%s1188_s1 + $0x150] sm:$0xff]   ;;  %v917_v43 = vld [vmem:[%s1188_s1 + $0x158] sm:$0xff]  }
   0xf   :  { %790 = vmatpush3.bf16.msra.mxu0 %v886_v13  ;;  %v916_v42 = vld [vmem:[%s1188_s1 + $0x110] sm:$0xff]   ;;  %v918_v44 = vld [vmem:[%s1188_s1 + $0x118] sm:$0xff]   ;;  %v919_v45 = vld [vmem:[%s1188_s1 + $0x160] sm:$0xff]  }
  0x10   :  { %791 = vmatprep.subr.bf16.mxu0 %v889_v16  ;;  %v920_v46 = vld [vmem:[%s1188_s1 + $0x120] sm:$0xff]   ;;  %v921_v47 = vld [vmem:[%s1188_s1 + $0x168] sm:$0xff]   ;;  %v930_v50 = vld [vmem:[%s1187_s0 + $0x14] ss:$28 sps:$4 sm:$0xff]  }
  0x11   :  { %812 = vmatpush3.bf16.msra.mxu1 %v888_v15  ;;  %v927_v48 = vld [vmem:[%s1188_s1 + $0x180] sm:$0xff]   ;;  %v922_v49 = vld [vmem:[%s1188_s1 + $0x128] sm:$0xff]   ;;  %v931_v51 = vld [vmem:[%s1187_s0 + $0x18] ss:$28 sps:$4 sm:$0xff]  }
  0x12   :  { %813 = vmatprep.subr.bf16.mxu1 %v891_v18  ;;  %v923_v52 = vld [vmem:[%s1188_s1 + $0x170] sm:$0xff]  }
  0x13   :  { %792 = vmatpush3.bf16.msra.mxu0 %v890_v17 }
  0x14   :  { %793 = vmatprep.subr.bf16.mxu0 %v893_v20 }
  0x15   :  { %814 = vmatpush3.bf16.msra.mxu1 %v892_v19 }
  0x16   :  { %815 = vmatprep.subr.bf16.mxu1 %v895_v22 }
  0x17   :  { %794 = vmatpush3.bf16.msra.mxu0 %v894_v21 }
  0x18   :  { %795 = vmatprep.subr.bf16.mxu0 %v897_v24 }
  0x19   :  { %816 = vmatpush3.bf16.msra.mxu1 %v896_v23 }
  0x1a   :  { %817 = vmatprep.subr.bf16.mxu1 %v899_v26 }
  0x1b   :  { %796 = vmatpush3.bf16.msra.mxu0 %v898_v25 }
  0x1c   :  { %797 = vmatprep.subr.bf16.mxu0 %v901_v28 }
  0x1d   :  { %818 = vmatpush3.bf16.msra.mxu1 %v900_v27 }
  0x1e   :  { %819 = vmatprep.subr.bf16.mxu1 %v903_v30 }
  0x1f   :  { %798 = vmatpush3.bf16.msra.mxu0 %v902_v29 }
  0x20   :  { %827 = vmatprep.subr.bf16.mxu0 %v908_v34 }
  0x21   :  { %820 = vmatpush3.bf16.msra.mxu1 %v907_v33 }
  0x22   :  { %501 = vmatmul.mubr.bf16.vlgmr.msra.gmra.mrb[0].mxu0 %v904_v31  ;;  %854 = vmatprep.subr.bf16.mxu1 %v958_v38 }
  0x23   :  { %828 = vmatpush3.bf16.msra.mxu0 %v912_v37  ;;  %582 = vmatprep.mubr.bf16.mxu0 %v930_v50 }
  0x24   :  { %542 = vmatmul.mubr.bf16.vlgmr.msra.gmra.mrb[0].mxu1 %v909_v35  ;;  %829 = vmatprep.subr.bf16.mxu0 %v913_v39 }
  0x25   :  { %856 = vmatprep.mubr.msk.bf16.mxu1 %vm959_vm0, %v958_v38  ;;  %855 = vmatpush3.bf16.msra.mxu1 %v927_v48 }
  0x26   :  { %860 = vmatprep.subr.bf16.mxu1 %v958_v38 }
  0x27   :  { %830 = vmatpush3.bf16.msra.mxu0 %v914_v40 }
  0x28   :  { %831 = vmatprep.subr.bf16.mxu0 %v915_v41 }
  0x2b   :  { %832 = vmatpush3.bf16.msra.mxu0 %v916_v42 }
  0x2c   :  { %833 = vmatprep.subr.bf16.mxu0 %v917_v43 }
  0x2f   :  { %834 = vmatpush3.bf16.msra.mxu0 %v918_v44 }
  0x30   :  { %835 = vmatprep.subr.bf16.mxu0 %v919_v45 }
  0x33   :  { %836 = vmatpush3.bf16.msra.mxu0 %v920_v46 }
  0x34   :  { %837 = vmatprep.subr.bf16.mxu0 %v921_v47 }
  0x35   :  { %10 = vsyncpa [#allocation3], 0  ;;  %857 = vmatmul.mubr.msk.bf16.vlgmr.msra.gmra.mrb[4].mxu1 %vm464_vm1, %v931_v51  ;;  %v924_v53 = vld [vmem:[%s1188_s1 + $0x130] sm:$0xff]   ;;  %v925_v54 = vld [vmem:[%s1188_s1 + $0x178] sm:$0xff]   ;;  %vm658_vm2 = vcmask 261120  }
  0x36   :  { %864 = vmatprep.mubr.msk.bf16.mxu1 %vm959_vm0, %v958_v38  ;;  %v926_v55 = vld [vmem:[%s1188_s1 + $0x138] sm:$0xff]   ;;  %v928_v56 = vld [vmem:[%s1187_s0 + $0x10] ss:$28 sps:$4 sm:$0xff]   ;;  %v932_v57 = vld [vmem:[%s1190_s3] sm:$0xff]  }
  0x37   :  { %838 = vmatpush3.bf16.msra.mxu0 %v922_v49  ;;  %861 = vmatpush3.bf16.msra.mxu1 %v932_v57  ;;  %v933_v58 = vld [vmem:[%s1190_s3 + $0x8] sm:$0xff]   ;;  %v721_v60 = vld [vmem:[%s1189_s2] ss:$0 sm:$0xff]  ;;  %s960_s3 = smov [#allocation2]  }
  0x38   :  { %839 = vmatprep.subr.bf16.mxu0 %v923_v52  ;;  %862 = vmatprep.subr.bf16.mxu1 %v958_v38  ;;  %v779_v29 = vld [vmem:[%s1191_s4] ss:$0 sm:$0xff]  ;;  %s710_s10 = sshll.u32 %s960_s3, 4  ;;  %s711_s10 = int_to_ptr.vmem [resolvable:$true] %s710_s10 }
  0x39   :  { %s934_s11 = scalar_lea.vmem %s711_s10, 256  ;;  %p939_p1 = scmp.lt.s32.totalorder %s711_s10, %s711_s10 }
  0x3a   :  { %p935_p0 = scmp.ne.s32.totalorder %s711_s10, %s934_s11  ;;  %p940_p2 = scmp.lt.s32.totalorder %s934_s11, %s934_s11 }
  0x3b   :  { %840 = vmatpush3.bf16.msra.mxu0 %v924_v53  ;;  %863 = vmatpush3.bf16.msra.mxu1 %v933_v58 }
  0x3c   :  { %841 = vmatprep.subr.bf16.mxu0 %v925_v54  ;;  %p941_p3 = por %p940_p2, %p939_p1 }
  0x3e   :  { %p942_p4 = pnand %p941_p3, %p935_p0 }
  0x3f   :  { %842 = vmatpush3.bf16.msra.mxu0 %v926_v55 }
  0x42   :  { %583 = vmatmul.mubr.bf16.vlgmr.msra.gmra.mrb[4].mxu0 %v928_v56 }
  0xf5   :  { %v799_v59 = vpop.f32.mrb[0].mxu0 }
  0xf6   :  { %v800_v61 = vpop.f32.mrb[1].mxu0 }
  0xf7   :  { %v801_v62 = vadd.f32 %v800_v61, %v799_v59  ;;  %v802_v63 = vpop.f32.mrb[2].mxu0  ;;  %v821_v0 = vpop.f32.mrb[0].mxu1 }
  0xf8   :  { %v803_v1 = vpop.f32.mrb[3].mxu0  ;;  %v822_v4 = vpop.f32.mrb[1].mxu1 }
  0xf9   :  { %v503_v2 = vadd.f32 %v801_v62, %v721_v60  ;;  %v804_v3 = vadd.f32 %v803_v1, %v802_v63  ;;  %v823_v5 = vadd.f32 %v822_v4, %v821_v0  ;;  %v824_v6 = vpop.f32.mrb[2].mxu1 }
  0xfa   :  { %v825_v8 = vpop.f32.mrb[3].mxu1 }
  0xfb   :  { %v506_v7 = vadd.f32 %v804_v3, %v721_v60  ;;  %v544_v9 = vadd.f32 %v823_v5, %v503_v2  ;;  %v826_v10 = vadd.f32 %v825_v8, %v824_v6 }
  0xfd   :  { %v547_v11 = vadd.f32 %v826_v10, %v506_v7 }
 0x108   :  { %v625_v12 = vpop.f32.mrb[4].mxu1 }
 0x109   :  { %v858_v13 = vpop.f32.mrb[5].mxu1 }
 0x10a   :  { %v628_v14 = vpop.f32.mrb[6].mxu1 }
 0x10b   :  { %v859_v15 = vpop.f32.mrb[7].mxu1 }
 0x115   :  { %v843_v16 = vpop.f32.mrb[4].mxu0 }
 0x116   :  { %v844_v17 = vpop.f32.mrb[5].mxu0 }
 0x117   :  { %v845_v18 = vadd.f32 %v844_v17, %v843_v16  ;;  %v846_v19 = vpop.f32.mrb[6].mxu0 }
 0x118   :  { %v847_v20 = vpop.f32.mrb[7].mxu0 }
 0x119   :  { %v585_v21 = vadd.f32 %v845_v18, %v544_v9  ;;  %v848_v22 = vadd.f32 %v847_v20, %v846_v19 }
 0x11b   :  { %v626_v23 = vadd.f32 %v625_v12, %v585_v21  ;;  %v588_v24 = vadd.f32 %v848_v22, %v547_v11 }
 0x11d   :  { %v629_v25 = vadd.f32 %v628_v14, %v588_v24  ;;  %v632_v26 = vmax.f32 %v626_v23, 0.0 }
 0x11f   :  { %v633_v27 = vmax.f32 %v629_v25, 0.0 }
 0x121   :  { %v634_v28 = vpack.c.bf16 %v633_v27, %v632_v26 }
 0x123   :  { %865 = vmatmul.mubr.msk.bf16.vlgmr.msra.gmra.mrb[8].mxu1 %vm658_vm2, %v634_v28 }
 0x1f6   :  { %v696_v30 = vpop.f32.mrb[8].mxu1 }
 0x1f7   :  { %v697_v31 = vadd.f32 %v779_v29, %v696_v30  ;;  %v866_v32 = vpop.f32.mrb[9].mxu1 }
 0x1f8   :  { %v699_v33 = vpop.f32.mrb[10].mxu1 }
 0x1f9   :  { %703 = vst [vmem:[#allocation2] sm:$0xff] %v697_v31  ;;  %v700_v34 = vadd.f32 %v779_v29, %v699_v33  ;;  %v867_v35 = vpop.f32.mrb[11].mxu1 }
 0x1fb   :  { %704 = vst [vmem:[#allocation2 + $0x8] sm:$0xff] %v700_v34 }
 0x1fc   :  { %945 = shalt.err (!%p942_p4)
}
 0x1fd   :  { %s946_s13 = scalar_lea.hbm %s1192_s5, 256 }
 0x1fe   :  { %p947_p5 = scmp.ne.s32.totalorder %s1192_s5, %s946_s13  ;;  %p950_p6 = scmp.lt.u32.totalorder %s946_s13, %s1192_s5 }
 0x200   :  { %p952_p7 = pnand %p950_p6, %p947_p5 }
 0x202   :  { %955 = shalt.err (!%p952_p7)
}
 0x203   :  { %s961_s18 = smov 128   ;;  %s962_s19 = smov 8  }
 0x204   :  { %716 = dma.vmem_to_hbm [thread:$0]  %s711_s10, 256, %s1192_s5, [#allocation3], %s961_s18, %s961_s18, %s962_s19  }
 0x205   :  { %956 = dma.done.wait [#allocation3], 256  }
 0x206   :  { %957 = vsyncadd [#allocation3], 4294967040 }
 0x207   :  { %720 = vsyncpa [#allocation3], 1 }

</bundles_post_ra>
